<compile_context>
chip_gen: v6e
topology: v6e:2x2x1
jax: 0.10.0
libtpu: 0.0.40
codegen_flags: <defaults>
</compile_context>

<pallas_src>
import math

import jax
import jax.numpy as jnp
from jax.experimental import pallas as pl
from jax.experimental.pallas import tpu as pltpu


# ---------------------------------------------------------------------------
# Kernels
# ---------------------------------------------------------------------------

def _conv_stats_kernel(xm_ref, xh_ref, wt_ref, y_ref, st_ref):
    """One (batch, H-tile) grid step of conv3x3 (padding=1) + per-tile BN partial stats.

    xm_ref: (1, TH, W+2, Cin)   main rows of the zero-padded input
    xh_ref: (1, 2,  W+2, Cin)   2-row halo below the main rows
    wt_ref: (9*Cin, Cp)         folded conv weights (Cout padded to Cp lanes)
    y_ref : (1, TH, W, Cp)      f32 conv output (pre-BN), lane-dense
    st_ref: (1, 1, 2, Cp)       per-tile [sum, sum-of-squares] per channel (f32)
    """
    th = xm_ref.shape[1]
    wout = y_ref.shape[2]
    cin = xm_ref.shape[3]
    cp = y_ref.shape[3]

    # (TH+2, W+2, Cin) padded tile, assembled from the main block + halo block.
    xt = jnp.concatenate([xm_ref[0], xh_ref[0]], axis=0)

    # Implicit im2col: 9 shifted views -> (TH*W, 9*Cin) patch matrix in VMEM.
    parts = []
    for kh in range(3):
        for kw in range(3):
            parts.append(xt[kh:kh + th, kw:kw + wout, :].reshape(th * wout, cin))
    patches = jnp.concatenate(parts, axis=-1)                   # (TH*W, 9*Cin)

    # Single MXU matmul, K = 9*Cin, f32 accumulation.
    acc = jnp.dot(patches, wt_ref[...], preferred_element_type=jnp.float32)

    y_ref[...] = acc.reshape(1, th, wout, cp)

    s = jnp.sum(acc, axis=0, keepdims=True)                     # (1, Cp)
    ss = jnp.sum(acc * acc, axis=0, keepdims=True)              # (1, Cp)
    st_ref[...] = jnp.concatenate([s, ss], axis=0).reshape(1, 1, 2, cp)


def _bn_relu_kernel(y_ref, scale_ref, bias_ref, o_ref):
    """Apply the folded BN affine + ReLU to one (TR, Cp) row tile; store true channels."""
    cout = o_ref.shape[-1]
    h = y_ref[...] * scale_ref[...] + bias_ref[...]
    h = jnp.maximum(h, 0.0)
    o_ref[...] = h[:, :cout].astype(o_ref.dtype)


# ---------------------------------------------------------------------------
# Wrappers
# ---------------------------------------------------------------------------

def _round_up(x, m):
    return (x + m - 1) // m * m


def _nbytes(shape, dtype):
    n = 1
    for d in shape:
        n *= d
    return n * jnp.dtype(dtype).itemsize


def _vmem_limit_bytes(per_step_bytes):
    # ~2 pipeline buffers per blocked operand + headroom for in-kernel temporaries;
    # clamp into a range that is valid on v5e/v6e (128 MiB VMEM) and v7x (64 MiB).
    need = 2 * per_step_bytes
    return int(min(max(6 * need, 16 * 1024 * 1024), 48 * 1024 * 1024))


def _pick_tile_h(h, w):
    """Largest even divisor of H with roughly 512-1024 output rows (tile_h * W) per step."""
    target = max(2, 1024 // max(w, 1))
    th = min(h, target)
    while th > 2 and not (h % th == 0 and th % 2 == 0):
        th -= 1
    return th


def conv_bn_relu(x_nhwc, w_hwio, gamma, beta, *, compute_dtype=jnp.bfloat16,
                 out_dtype=jnp.float32, tile_h=None, tile_rows=512, eps=1e-5):
    """Conv3x3 (padding=1, no bias) -> BatchNorm (batch stats) -> ReLU, NHWC in/out."""
    n, h, w, cin = x_nhwc.shape
    cout = w_hwio.shape[-1]
    cp = _round_up(cout, 128)                 # lane-dense compute / intermediate width

    assert w % 8 == 0, "width must be a multiple of 8 for the in-kernel patch reshape"
    assert h % 2 == 0, "height must be even (2-row halo blocks)"
    if tile_h is None:
        tile_h = _pick_tile_h(h, w)
    assert h % tile_h == 0 and tile_h % 2 == 0, (h, tile_h)
    n_t = h // tile_h
    th = tile_h
    half_th = th // 2

    # Zero-padded NHWC input (spatial pad 1) and folded / lane-padded weights.
    xp = jnp.pad(x_nhwc.astype(compute_dtype), ((0, 0), (1, 1), (1, 1), (0, 0)))
    wpad = jnp.pad(w_hwio.astype(jnp.float32), ((0, 0), (0, 0), (0, 0), (0, cp - cout)))
    wfold = wpad.reshape(9 * cin, cp).astype(compute_dtype)     # (kh,kw,ci) folded into K

    # ---------------- pass 1: conv + per-tile BN partial stats ----------------
    per_step = (_nbytes((1, th, w + 2, cin), compute_dtype)
                + _nbytes((1, 2, w + 2, cin), compute_dtype)
                + _nbytes((9 * cin, cp), compute_dtype)
                + _nbytes((1, th, w, cp), jnp.float32)
                + _nbytes((1, 1, 2, cp), jnp.float32))
    y, stats = pl.pallas_call(
        _conv_stats_kernel,
        out_shape=(
            jax.ShapeDtypeStruct((n, h, w, cp), jnp.float32),
            jax.ShapeDtypeStruct((n, n_t, 2, cp), jnp.float32),
        ),
        grid=(n, n_t),
        in_specs=[
            pl.BlockSpec((1, th, w + 2, cin), lambda ni, ti: (ni, ti, 0, 0)),
            pl.BlockSpec((1, 2, w + 2, cin),
                         lambda ni, ti: (ni, (ti + 1) * half_th, 0, 0)),
            pl.BlockSpec((9 * cin, cp), lambda ni, ti: (0, 0)),
        ],
        out_specs=(
            pl.BlockSpec((1, th, w, cp), lambda ni, ti: (ni, ti, 0, 0)),
            pl.BlockSpec((1, 1, 2, cp), lambda ni, ti: (ni, ti, 0, 0)),
        ),
        compiler_params=pltpu.CompilerParams(
            dimension_semantics=("parallel", "parallel"),
            vmem_limit_bytes=_vmem_limit_bytes(per_step)),
    )(xp, xp, wfold)

    # Fold batch statistics (biased variance, training mode) + gamma/beta into an affine.
    cnt = float(n * h * w)
    tot = jnp.sum(stats, axis=(0, 1))                           # (2, Cp)
    mean = tot[0] / cnt
    var = jnp.maximum(tot[1] / cnt - mean * mean, 0.0)
    inv = jax.lax.rsqrt(var + eps)
    gamma_p = jnp.pad(gamma.astype(jnp.float32), (0, cp - cout))
    beta_p = jnp.pad(beta.astype(jnp.float32), (0, cp - cout))
    scale = (gamma_p * inv).reshape(1, cp)
    bias = (beta_p - mean * gamma_p * inv).reshape(1, cp)

    # ---------------- pass 2: normalize + ReLU, slice to true channels ----------------
    rows = n * h * w
    tr = min(tile_rows, rows)
    if rows % tr:
        tr = math.gcd(rows, tr)
    per_step2 = (_nbytes((tr, cp), jnp.float32) + 2 * _nbytes((1, cp), jnp.float32)
                 + _nbytes((tr, cout), out_dtype))
    out2d = pl.pallas_call(
        _bn_relu_kernel,
        out_shape=jax.ShapeDtypeStruct((rows, cout), out_dtype),
        grid=(rows // tr,),
        in_specs=[
            pl.BlockSpec((tr, cp), lambda i: (i, 0)),
            pl.BlockSpec((1, cp), lambda i: (0, 0)),
            pl.BlockSpec((1, cp), lambda i: (0, 0)),
        ],
        out_specs=pl.BlockSpec((tr, cout), lambda i: (i, 0)),
        compiler_params=pltpu.CompilerParams(
            dimension_semantics=("parallel",),
            vmem_limit_bytes=_vmem_limit_bytes(per_step2)),
    )(y.reshape(rows, cp), scale, bias)
    return out2d.reshape(n, h, w, cout)


class DoubleConvPallas:
    """(conv3x3 no-bias => BN(train-mode) => ReLU) * 2, matching the PyTorch module."""

    def __init__(self, in_channels, out_channels, mid_channels=None, key=None,
                 compute_dtype=jnp.bfloat16, tile_h=None):
        if not mid_channels:
            mid_channels = out_channels
        if key is None:
            key = jax.random.PRNGKey(0)
        k1, k2, k3, k4, k5, k6 = jax.random.split(key, 6)
        # PyTorch conv weights are (out, in, kh, kw); stored here as HWIO (kh, kw, in, out).
        self.w1 = 0.1 * jax.random.normal(k1, (3, 3, in_channels, mid_channels), jnp.float32)
        self.w2 = 0.1 * jax.random.normal(k2, (3, 3, mid_channels, out_channels), jnp.float32)
        self.gamma1 = 1.0 + 0.05 * jax.random.normal(k3, (mid_channels,), jnp.float32)
        self.beta1 = 0.05 * jax.random.normal(k4, (mid_channels,), jnp.float32)
        self.gamma2 = 1.0 + 0.05 * jax.random.normal(k5, (out_channels,), jnp.float32)
        self.beta2 = 0.05 * jax.random.normal(k6, (out_channels,), jnp.float32)
        self.compute_dtype = compute_dtype
        self.tile_h = tile_h

    def __call__(self, x_nchw, compute_dtype=None):
        cd = self.compute_dtype if compute_dtype is None else compute_dtype
        x = jnp.transpose(x_nchw, (0, 2, 3, 1))                 # NCHW -> NHWC
        # Inter-layer activation kept in NHWC, compute dtype (bf16 on the fast path),
        # true channel count -> written once, read once (plus halo) by layer 2.
        h1 = conv_bn_relu(x, self.w1, self.gamma1, self.beta1,
                          compute_dtype=cd, out_dtype=cd, tile_h=self.tile_h)
        h2 = conv_bn_relu(h1, self.w2, self.gamma2, self.beta2,
                          compute_dtype=cd, out_dtype=jnp.float32, tile_h=self.tile_h)
        return jnp.transpose(h2, (0, 3, 1, 2))                  # NHWC -> NCHW


# ---------------------------------------------------------------------------
# Reference (pure JAX) — emulates the kernel's compute dtype so the check is tight.
# ---------------------------------------------------------------------------

def _reference(module, x_nchw, compute_dtype):
    f32 = jnp.float32

    def rnd(a):  # emulate casting inputs/weights (and stored h1) to the MXU dtype
        return a.astype(compute_dtype).astype(f32)

    def layer(h, w, g, b):
        y = jax.lax.conv_general_dilated(
            rnd(h), rnd(w), window_strides=(1, 1), padding=((1, 1), (1, 1)),
            dimension_numbers=("NHWC", "HWIO", "NHWC"))
        mean = jnp.mean(y, axis=(0, 1, 2), keepdims=True)
        var = jnp.mean((y - mean) ** 2, axis=(0, 1, 2), keepdims=True)
        yn = (y - mean) * jax.lax.rsqrt(var + 1e-5) * g + b
        return jnp.maximum(yn, 0.0)

    x = jnp.transpose(x_nchw, (0, 2, 3, 1)).astype(f32)
    h1 = rnd(layer(x, module.w1, module.gamma1, module.beta1))
    h2 = layer(h1, module.w2, module.gamma2, module.beta2)
    return jnp.transpose(h2, (0, 3, 1, 2))


if __name__ == "__main__":
    key = jax.random.PRNGKey(0)
    kx, kp = jax.random.split(key)
    N, Cin, H, W = 2, 4, 16, 16
    Cout = 8
    x = jax.random.normal(kx, (N, Cin, H, W), jnp.float32)

    # tile_h=8 -> two H-tiles per image, exercising the halo path and the per-tile
    # stats reduction even at this toy size (auto picker would use larger tiles).
    module = DoubleConvPallas(Cin, Cout, key=kp, tile_h=8)

    # 1) Structural check: f32 compute path vs. pure-f32 reference (tight tolerance).
    out_f32 = jax.block_until_ready(module(x, compute_dtype=jnp.float32))
    ref_f32 = jax.block_until_ready(_reference(module, x, jnp.float32))
    assert out_f32.shape == (N, Cout, H, W), out_f32.shape
    err_f32 = float(jnp.max(jnp.abs(out_f32 - ref_f32)))
    assert jnp.allclose(out_f32, ref_f32, rtol=1e-4, atol=1e-4), err_f32

    # 2) Performance path: bf16 MXU inputs / f32 accumulation+BN (default).
    out_bf16 = jax.block_until_ready(module(x))
    ref_bf16 = jax.block_until_ready(_reference(module, x, jnp.bfloat16))
    err_bf16 = float(jnp.max(jnp.abs(out_bf16 - ref_bf16)))
    assert jnp.allclose(out_bf16, ref_bf16, rtol=1e-2, atol=1e-2), err_bf16

    print("KERNEL_OK")
</pallas_src>

<mosaic_0001>
module attributes {stable_mosaic.version = 11 : i64} {
  func.func @_conv_stats_kernel(%arg0: i32, %arg1: i32, %arg2: memref<1x8x18x4xf32, #tpu.memory_space<vmem>>, %arg3: memref<1x2x18x4xf32, #tpu.memory_space<vmem>>, %arg4: memref<36x128xf32, #tpu.memory_space<vmem>>, %arg5: memref<1x8x16x128xf32, #tpu.memory_space<vmem>>, %arg6: memref<1x1x2x128xf32, #tpu.memory_space<vmem>>) attributes {dimension_semantics = [#tpu.dimension_semantics<parallel>, #tpu.dimension_semantics<parallel>], iteration_bounds = array<i64: 2, 2>, scalar_prefetch = 0 : i64, scratch_operands = 0 : i64, tpu.core_type = #tpu.core_type<tc>, window_params = [{transform_indices = @transform_0, window_bounds = array<i64: 1, 8, 18, 4>}, {transform_indices = @transform_1, window_bounds = array<i64: 1, 2, 18, 4>}, {pipeline_mode = #tpu.pipeline_mode<synchronous>, transform_indices = @transform_2, window_bounds = array<i64: 36, 128>}, {transform_indices = @transform_3, window_bounds = array<i64: 1, 8, 16, 128>}, {transform_indices = @transform_4, window_bounds = array<i64: 1, 1, 2, 128>}]} {
    %c0 = arith.constant 0 : index
    %c0_0 = arith.constant 0 : index
    %c0_1 = arith.constant 0 : index
    %c0_2 = arith.constant 0 : index
    %0 = vector.load %arg2[%c0, %c0_0, %c0_1, %c0_2] : memref<1x8x18x4xf32, #tpu.memory_space<vmem>>, vector<1x8x18x4xf32>
    %1 = vector.shape_cast %0 : vector<1x8x18x4xf32> to vector<8x18x4xf32>
    %c0_3 = arith.constant 0 : index
    %c0_4 = arith.constant 0 : index
    %c0_5 = arith.constant 0 : index
    %c0_6 = arith.constant 0 : index
    %2 = vector.load %arg3[%c0_3, %c0_4, %c0_5, %c0_6] : memref<1x2x18x4xf32, #tpu.memory_space<vmem>>, vector<1x2x18x4xf32>
    %3 = vector.shape_cast %2 : vector<1x2x18x4xf32> to vector<2x18x4xf32>
    %4 = tpu.concatenate %1, %3 in 0 : vector<8x18x4xf32>, vector<2x18x4xf32> -> vector<10x18x4xf32>
    %5 = vector.extract_strided_slice %4 {offsets = [0, 0, 0], sizes = [8, 16, 4], strides = [1, 1, 1]} : vector<10x18x4xf32> to vector<8x16x4xf32>
    %6 = vector.shape_cast %5 : vector<8x16x4xf32> to vector<128x4xf32>
    %7 = vector.extract_strided_slice %4 {offsets = [0, 1, 0], sizes = [8, 16, 4], strides = [1, 1, 1]} : vector<10x18x4xf32> to vector<8x16x4xf32>
    %8 = vector.shape_cast %7 : vector<8x16x4xf32> to vector<128x4xf32>
    %9 = vector.extract_strided_slice %4 {offsets = [0, 2, 0], sizes = [8, 16, 4], strides = [1, 1, 1]} : vector<10x18x4xf32> to vector<8x16x4xf32>
    %10 = vector.shape_cast %9 : vector<8x16x4xf32> to vector<128x4xf32>
    %11 = vector.extract_strided_slice %4 {offsets = [1, 0, 0], sizes = [8, 16, 4], strides = [1, 1, 1]} : vector<10x18x4xf32> to vector<8x16x4xf32>
    %12 = vector.shape_cast %11 : vector<8x16x4xf32> to vector<128x4xf32>
    %13 = vector.extract_strided_slice %4 {offsets = [1, 1, 0], sizes = [8, 16, 4], strides = [1, 1, 1]} : vector<10x18x4xf32> to vector<8x16x4xf32>
    %14 = vector.shape_cast %13 : vector<8x16x4xf32> to vector<128x4xf32>
    %15 = vector.extract_strided_slice %4 {offsets = [1, 2, 0], sizes = [8, 16, 4], strides = [1, 1, 1]} : vector<10x18x4xf32> to vector<8x16x4xf32>
    %16 = vector.shape_cast %15 : vector<8x16x4xf32> to vector<128x4xf32>
    %17 = vector.extract_strided_slice %4 {offsets = [2, 0, 0], sizes = [8, 16, 4], strides = [1, 1, 1]} : vector<10x18x4xf32> to vector<8x16x4xf32>
    %18 = vector.shape_cast %17 : vector<8x16x4xf32> to vector<128x4xf32>
    %19 = vector.extract_strided_slice %4 {offsets = [2, 1, 0], sizes = [8, 16, 4], strides = [1, 1, 1]} : vector<10x18x4xf32> to vector<8x16x4xf32>
    %20 = vector.shape_cast %19 : vector<8x16x4xf32> to vector<128x4xf32>
    %21 = vector.extract_strided_slice %4 {offsets = [2, 2, 0], sizes = [8, 16, 4], strides = [1, 1, 1]} : vector<10x18x4xf32> to vector<8x16x4xf32>
    %22 = vector.shape_cast %21 : vector<8x16x4xf32> to vector<128x4xf32>
    %23 = tpu.concatenate %6, %8, %10, %12, %14, %16, %18, %20, %22 in 1 : vector<128x4xf32>, vector<128x4xf32>, vector<128x4xf32>, vector<128x4xf32>, vector<128x4xf32>, vector<128x4xf32>, vector<128x4xf32>, vector<128x4xf32>, vector<128x4xf32> -> vector<128x36xf32>
    %c0_7 = arith.constant 0 : index
    %c0_8 = arith.constant 0 : index
    %24 = vector.load %arg4[%c0_7, %c0_8] : memref<36x128xf32, #tpu.memory_space<vmem>>, vector<36x128xf32>
    %cst = arith.constant dense<0.000000e+00> : vector<128x128xf32>
    %25 = tpu.matmul %23, %24, %cst {dimension_numbers = #tpu.dot_dimension_numbers<[1], [0], [0], [1], [0, 0, 1, 1], [], []>} : vector<128x36xf32>, vector<36x128xf32>, vector<128x128xf32> -> vector<128x128xf32>
    %26 = vector.shape_cast %25 : vector<128x128xf32> to vector<1x8x16x128xf32>
    %c0_9 = arith.constant 0 : index
    %c0_10 = arith.constant 0 : index
    %c0_11 = arith.constant 0 : index
    %c0_12 = arith.constant 0 : index
    %27 = vector.load %arg5[%c0_9, %c0_10, %c0_11, %c0_12] : memref<1x8x16x128xf32, #tpu.memory_space<vmem>>, vector<1x8x16x128xf32>
    tpu.vector_store %arg5[%c0_9, %c0_10, %c0_11, %c0_12], %26 {strides = array<i32>} : memref<1x8x16x128xf32, #tpu.memory_space<vmem>>, vector<1x8x16x128xf32>,
    %cst_13 = arith.constant dense<0.000000e+00> : vector<128xf32>
    %28 = vector.multi_reduction <add>, %25, %cst_13 [0] : vector<128x128xf32> to vector<128xf32>
    %29 = vector.shape_cast %28 : vector<128xf32> to vector<1x128xf32>
    %30 = arith.mulf %25, %25 : vector<128x128xf32>
    %cst_14 = arith.constant dense<0.000000e+00> : vector<128xf32>
    %31 = vector.multi_reduction <add>, %30, %cst_14 [0] : vector<128x128xf32> to vector<128xf32>
    %32 = vector.shape_cast %31 : vector<128xf32> to vector<1x128xf32>
    %33 = tpu.concatenate %29, %32 in 0 : vector<1x128xf32>, vector<1x128xf32> -> vector<2x128xf32>
    %34 = vector.shape_cast %33 : vector<2x128xf32> to vector<1x1x2x128xf32>
    %c0_15 = arith.constant 0 : index
    %c0_16 = arith.constant 0 : index
    %c0_17 = arith.constant 0 : index
    %c0_18 = arith.constant 0 : index
    %35 = vector.load %arg6[%c0_15, %c0_16, %c0_17, %c0_18] : memref<1x1x2x128xf32, #tpu.memory_space<vmem>>, vector<1x1x2x128xf32>
    tpu.vector_store %arg6[%c0_15, %c0_16, %c0_17, %c0_18], %34 {strides = array<i32>} : memref<1x1x2x128xf32, #tpu.memory_space<vmem>>, vector<1x1x2x128xf32>,
    return
  }
  func.func @transform_0(%arg0: i32, %arg1: i32) -> (i32, i32, i32, i32) {
    %c0_i32 = arith.constant 0 : i32
    %c0_i32_0 = arith.constant 0 : i32
    %c0_i32_1 = arith.constant 0 : i32
    return %arg0, %arg1, %c0_i32, %c0_i32_0 : i32, i32, i32, i32
  }
  func.func @transform_1(%arg0: i32, %arg1: i32) -> (i32, i32, i32, i32) {
    %c1_i32 = arith.constant 1 : i32
    %0 = arith.addi %arg1, %c1_i32 : i32
    %c4_i32 = arith.constant 4 : i32
    %1 = arith.muli %0, %c4_i32 : i32
    %c0_i32 = arith.constant 0 : i32
    %c0_i32_0 = arith.constant 0 : i32
    %c0_i32_1 = arith.constant 0 : i32
    return %arg0, %1, %c0_i32, %c0_i32_0 : i32, i32, i32, i32
  }
  func.func @transform_2(%arg0: i32, %arg1: i32) -> (i32, i32) {
    %c0_i32 = arith.constant 0 : i32
    %c0_i32_0 = arith.constant 0 : i32
    %c0_i32_1 = arith.constant 0 : i32
    return %c0_i32, %c0_i32_0 : i32, i32
  }
  func.func @transform_3(%arg0: i32, %arg1: i32) -> (i32, i32, i32, i32) {
    %c0_i32 = arith.constant 0 : i32
    %c0_i32_0 = arith.constant 0 : i32
    %c0_i32_1 = arith.constant 0 : i32
    return %arg0, %arg1, %c0_i32, %c0_i32_0 : i32, i32, i32, i32
  }
  func.func @transform_4(%arg0: i32, %arg1: i32) -> (i32, i32, i32, i32) {
    %c0_i32 = arith.constant 0 : i32
    %c0_i32_0 = arith.constant 0 : i32
    %c0_i32_1 = arith.constant 0 : i32
    return %arg0, %arg1, %c0_i32, %c0_i32_0 : i32, i32, i32, i32
  }
}

</mosaic_0001>

<bundles_post_ra>
// kernel: tpu_custom_call.1
= control target key start
LH: loop header
LB: loop body
LE: loop exit
PB: predicated region body
PF: predicated region fallthrough
CT: control target
= control target key end

     0   :  { %10 = vsyncpa [#allocation3], 0  ;;  %s2582_s0 = inlined_call_operand.vmem [shape: f32[2,18,18,4], index: 0, kind: input, shape index: {}]   ;;  %s2583_s1 = inlined_call_operand.vmem [shape: f32[2,18,18,4], index: 1, kind: input, shape index: {}]   ;;  %s2584_s2 = inlined_call_operand.vmem [shape: f32[36,128], index: 2, kind: input, shape index: {}]   ;;  %s2585_s3 = inlined_call_operand.hbm [shape: f32[2,16,16,128], index: 3, kind: output, shape index: {0}]   ;;  %s2586_s4 = inlined_call_operand.hbm [shape: f32[2,2,2,128], index: 4, kind: output, shape index: {1}]  }
   0x1   :  { %12 = vsyncpa [#allocation3 + $0x1], 0 }
   0x2   :  { %13 = vsyncpa [#allocation5], 0 }
   0x3   :  { %15 = vsyncpa [#allocation5 + $0x1], 0  ;;  %s1824_s15 = smov 0   ;;  %s1826_s16 = smov 0  }
   0x4   :  { %s1828_s17 = smov 0   ;;  %s1830_s18 = smov 0  }
   0x5   :  { %s1832_s19 = smov 0   ;;  %s1834_s20 = smov 0  }
   0x6   :  { %s1836_s21 = smov 0   ;;  %s1838_s22 = smov 0  }
   0x7 LB: > { %s1460_s23 = sadd.s32 4294967295, %s1786_s22   ;;  %s1461_s24 = sadd.s32 4294967294, %s1786_s22   ;;  %s1786_s22 = sphi %s1838_s22, %s21_s22   ;;  %s1782_s21 = sphi %s1836_s21, %s2610_s21   ;;  %s1778_s20 = sphi %s1834_s20, %s2609_s20   ;;  %s1774_s19 = sphi %s1832_s19, %s2608_s19   ;;  %s1770_s18 = sphi %s1830_s18, %s2607_s18   ;;  %s1766_s17 = sphi %s1828_s17, %s2606_s17   ;;  %s1762_s16 = sphi %s1826_s16, %s2605_s16   ;;  %s1758_s15 = sphi %s1824_s15, %s2604_s15  }
   0x8   : > { %s30_s25 = sadd.s32 1, %s1778_s20  ;;  %s33_s26 = sadd.s32 1, %s1782_s21 }
   0x9   : > { %p31_p0 = scmp.ge.s32.totalorder %s30_s25, 2  ;;  %p133_p1 = scmp.ne.s32.totalorder %s1766_s17, %s1762_s16 }
   0xa   : > { %p134_p2 = scmp.eq.s32.totalorder %s1460_s23, 3  ;;  %p139_p5 = scmp.ne.s32.totalorder %s1762_s16, %s1758_s15 }
   0xb   : > { %s2612_s25 = smov (%p31_p0, %s30_s25), 0  ;;  %s2614_s26 = smov (!%p31_p0, %s33_s26), %s1782_s21 }
   0xc   : > { %s119_s27 = ssub.s32 %s1778_s20, %s2612_s25  ;;  %p1875_p3 = por %p134_p2, %p133_p1 }
   0xd   : > { %p35_p4 = scmp.ge.s32.totalorder %s2614_s26, 2  ;;  %p140_p6 = scmp.eq.s32.totalorder %s1461_s24, 3 }
   0xe   : > { %p1466_p7 = scmp.ge.s32.totalorder %s1786_s22, 1  ;;  %p231_p9 = scmp.lt.s32.totalorder %s1786_s22, 5 }
   0xf   : > { %s2616_s26 = smov (%p35_p4, %s2614_s26), 0  ;;  %p1884_p8 = por %p140_p6, %p139_p5 }
  0x10   : > { %s118_s30 = ssub.s32 %s1782_s21, %s2616_s26  ;;  %s123_s5 = sadd.s32 1, %s1766_s17 }
  0x11   : > { %s120_s6 = sor.u32 %s119_s27, %s118_s30  ;;  %p232_p10 = pnand %p1466_p7, %p231_p9 }
  0x12   : > { %p121_p11 = scmp.eq.s32.totalorder %s120_s6, 0  ;;  %s1896_s8 = sshll.u32 (!%p232_p10), %s1770_s18, 3 }
  0x13   : > { %235 = sbr.rel (%p232_p10) target bundleno = 639 (0x27f), region = 32  ;;  %p290_p12 = scmp.lt.s32.totalorder (!%p232_p10), %s1774_s19, 1 }
  0x14   : > { %s1893_s7 = scalar_select %p121_p11, %s1766_s17, %s123_s5  }
  0x15   : > { %p292_p13 = scmp.lt.s32.totalorder (!%p232_p10), %s1896_s8, 17  ;;  %s2590_s30 = smov (!%p232_p10), 12  }
  0x16   : > { %s1789_s5 = smov (!%p232_p10), 8   ;;  %s1790_s6 = smov (!%p232_p10), 4  }
  0x17   : > { %s2592_s24 = smov (!%p232_p10), 28  }
  0x18   : > { %s1901_s9 = scalar_select %p290_p12, %s1774_s19, 1  ;;  %vm416_vm0 = vcmask 1045504   ;;  %vm375_vm1 = vcmask 1046528   ;;  %v1007_v28 = vld [vmem:[%s2584_s2 + $0x20] sm:$0xf]  ;;  %vm1057_vm2 = vcmask 1043456  }
  0x19   : > { %s293_s10 = scalar_select %p292_p13, %s1896_s8, 17  ;;  %1532 = vmatprep.subr.msk.mxu0 %vm1057_vm2, %v1007_v28  ;;  %1566 = vmatprep.subr.msk.mxu1 %vm1057_vm2, %v1007_v28  ;;  %v1006_v31 = vld [vmem:[%s2584_s2 + $0x18] sm:$0xff]  ;;  %v1005_v33 = vld [vmem:[%s2584_s2 + $0x10] sm:$0xff]  ;;  %v1004_v35 = vld [vmem:[%s2584_s2 + $0x8] sm:$0xff]  ;;  %vm867_vm3 = vcmask 31744   ;;  %vm884_vm4 = vcmask 64512  }
  0x1a   : > { %s2587_s11 = smul.u32 54, %s1901_s9  ;;  %1533 = vmatpush3.msk.msra.mxu0 %vm1057_vm2, %v1007_v28  ;;  %1571 = vmatpush3.msk.msra.mxu1 %vm1057_vm2, %v1007_v28  ;;  %v1003_v39 = vld [vmem:[%s2584_s2] sm:$0xff]  ;;  %vm901_vm5 = vcmask 97280   ;;  %vm918_vm6 = vcmask 130048   ;;  %vm935_vm7 = vcmask 162816   ;;  %vm952_vm8 = vcmask 195584  }
  0x1b   : > { %s1576_s12 = smul.u32 3, %s293_s10  ;;  %s2594_s10 = smov 16   ;;  %1534 = vmatprep.subr.mxu0 %v1006_v31  ;;  %1567 = vmatprep.subr.mxu1 %v1006_v31  ;;  %vm969_vm9 = vcmask 228352   ;;  %vm986_vm10 = vcmask 261120   ;;  %vm1008_vm11 = vcmask 293888  }
  0x1c   : > { %1535 = vmatpush3.msra.mxu0 %v1006_v31  ;;  %1572 = vmatpush3.msra.mxu1 %v1006_v31 }
  0x1d   : > { %s296_s13 = sadd.s32 %s2587_s11, %s1576_s12  ;;  %s2588_s12 = smov 20   ;;  %1536 = vmatprep.subr.mxu0 %v1005_v33  ;;  %1568 = vmatprep.subr.mxu1 %v1005_v33 }
  0x1e   : > { %s1470_s14 = sshll.u32 %s296_s13, 3  ;;  %s1793_s13 = smov 24   ;;  %1537 = vmatpush3.msra.mxu0 %v1005_v33  ;;  %1573 = vmatpush3.msra.mxu1 %v1005_v33 }
  0x1f   : > { %s1910_s27 = scalar_lea.vmem %s2582_s0, %s1470_s14  ;;  %1538 = vmatprep.subr.mxu0 %v1004_v35  ;;  %1569 = vmatprep.subr.mxu1 %v1004_v35  ;;  %s2598_s11 = smov 20  }
  0x20   : > { %v1913_v0 = vld [vmem:[%s1910_s27 + $0x20] sm:$0xff]  ;;  %v1916_v1 = vld [vmem:[%s1910_s27 + $0x18] sm:$0xff]  ;;  %v1926_v3 = vld [vmem:[%s1910_s27 + $0x8] sm:$0xff]  ;;  %1539 = vmatpush3.msra.mxu0 %v1004_v35  ;;  %1574 = vmatpush3.msra.mxu1 %v1004_v35  ;;  %s1510_s14 = sadd.s32 8, %s1896_s8 }
  0x21   : > { %v1919_v2 = vld [vmem:[%s1910_s27] sm:$0xff]  ;;  %581 = vrot.lane.b32.xlu1 %v1913_v0, %s2590_s30  ;;  %579 = vrot.lane.b32.xlu0 %v1916_v1, %s2590_s30  ;;  %v323_v6 = vld [vmem:[%s1910_s27 + $0x10] sm:$0x3]  ;;  %v418_v7 = vrot.slane %v1926_v3, 2  ;;  %v377_v8 = vrot.slane %v1926_v3, 1  ;;  %v381_v15 = vrot.slane %v1916_v1, 1 }
  0x22   : > { %v417_v4 = vrot.slane %v1919_v2, 2  ;;  %v376_v5 = vrot.slane %v1919_v2, 1  ;;  %v420_v9 = vrot.slane %v323_v6, 2  ;;  %v379_v10 = vrot.slane %v323_v6, 1  ;;  %v326_v17 = vld [vmem:[%s1910_s27 + $0x28] sm:$0x3]  ;;  %1540 = vmatprep.subr.mxu0 %v1003_v39  ;;  %1570 = vmatprep.subr.mxu1 %v1003_v39 }
  0x23   : > { %v382_v16 = vrot.slane %v1913_v0, 1  ;;  %v422_v19 = vrot.slane %v1916_v1, 2  ;;  %v423_v20 = vrot.slane %v1913_v0, 2  ;;  %v384_v21 = vrot.slane %v326_v17, 1  ;;  %v1956_v25 = vld [vmem:[%s1910_s27 + $0x30] sm:$0xff]  ;;  %v1960_v27 = vld [vmem:[%s1910_s27 + $0x38] sm:$0xff]  ;;  %1541 = vmatpush3.msra.mxu0 %v1003_v39  ;;  %1575 = vmatpush3.msra.mxu1 %v1003_v39 }
  0x24   : > { %v419_v11 = vsel %vm416_vm0, %v417_v4, %v418_v7  ;;  %v378_v12 = vsel %vm375_vm1, %v376_v5, %v377_v8  ;;  %v421_v13 = vsel %vm416_vm0, %v418_v7, %v420_v9  ;;  %v380_v14 = vsel %vm375_vm1, %v377_v8, %v379_v10  ;;  %v329_v34 = vld [vmem:[%s1910_s27 + $0x40] sm:$0x3]  ;;  %v2007_v44 = vld [vmem:[%s1910_s27 + $0x48] sm:$0xff]  ;;  %v2010_v45 = vld [vmem:[%s1910_s27 + $0x50] sm:$0xff]  ;;  %p310_p0 = scmp.lt.s32.totalorder %s1510_s14, 17 }
  0x25   : > { %531 = vrot.lane.b32.xlu1 %v419_v11, %s1789_s5  ;;  %483 = vrot.lane.b32.xlu0 %v378_v12, %s1790_s6  ;;  %v383_v18 = vsel %vm375_vm1, %v381_v15, %v382_v16  ;;  %v424_v22 = vsel %vm416_vm0, %v422_v19, %v423_v20  ;;  %v385_v23 = vsel %vm375_vm1, %v382_v16, %v384_v21  ;;  %v425_v24 = vrot.slane %v326_v17, 2  ;;  %v332_v49 = vld [vmem:[%s1910_s27 + $0x58] sm:$0x3]  ;;  %v2042_v57 = vld [vmem:[%s1910_s27 + $0x60] sm:$0xff] }
  0x26   : > { %v386_v29 = vrot.slane %v1956_v25, 1  ;;  %v387_v30 = vrot.slane %v1960_v27, 1  ;;  %v427_v36 = vrot.slane %v1956_v25, 2  ;;  %v428_v37 = vrot.slane %v1960_v27, 2  ;;  %v2045_v58 = vld [vmem:[%s1910_s27 + $0x68] sm:$0xff]  ;;  %v2079_v12 = vld [vmem:[%s1910_s27 + $0x78] sm:$0xff] }
  0x27   : > { %v426_v26 = vsel %vm416_vm0, %v423_v20, %v425_v24  ;;  %v389_v38 = vrot.slane %v329_v34, 1  ;;  %v430_v42 = vrot.slane %v329_v34, 2  ;;  %v391_v46 = vrot.slane %v2007_v44, 1  ;;  %v335_v62 = vld [vmem:[%s1910_s27 + $0x70] sm:$0x3]  ;;  %v2082_v15 = vld [vmem:[%s1910_s27 + $0x80] sm:$0xff] }
  0x28   : > { %v388_v32 = vsel %vm375_vm1, %v386_v29, %v387_v30  ;;  %v429_v40 = vsel %vm416_vm0, %v427_v36, %v428_v37  ;;  %v392_v47 = vrot.slane %v2010_v45, 1  ;;  %v432_v50 = vrot.slane %v2007_v44, 2  ;;  %s2618_s14 = smov (!%p310_p0, %s1510_s14), 17 }
  0x29   : > { %533 = vrot.lane.b32.xlu1 %v421_v13, %s1789_s5  ;;  %485 = vrot.lane.b32.xlu0 %v380_v14, %s1790_s6  ;;  %v390_v41 = vsel %vm375_vm1, %v387_v30, %v389_v38  ;;  %v431_v43 = vsel %vm416_vm0, %v428_v37, %v430_v42  ;;  %v433_v51 = vrot.slane %v2010_v45, 2  ;;  %v394_v52 = vrot.slane %v332_v49, 1  ;;  %s1578_s8 = smul.u32 3, %s2618_s14 }
  0x2a   : > { %v393_v48 = vsel %vm375_vm1, %v391_v46, %v392_v47  ;;  %v435_v55 = vrot.slane %v332_v49, 2  ;;  %v396_v59 = vrot.slane %v2042_v57, 1  ;;  %v397_v60 = vrot.slane %v2045_v58, 1 }
  0x2b   : > { %v434_v53 = vsel %vm416_vm0, %v432_v50, %v433_v51  ;;  %v395_v54 = vsel %vm375_vm1, %v392_v47, %v394_v52  ;;  %v437_v63 = vrot.slane %v2042_v57, 2  ;;  %v438_v4 = vrot.slane %v2045_v58, 2  ;;  %v2129_v47 = vld [vmem:[%s1910_s27 + $0x90] sm:$0xff]  ;;  %v2137_v50 = vld [vmem:[%s1910_s27 + $0x98] sm:$0xff] }
  0x2c   : > { %v436_v56 = vsel %vm416_vm0, %v433_v51, %v435_v55  ;;  %v398_v61 = vsel %vm375_vm1, %v396_v59, %v397_v60  ;;  %v399_v5 = vrot.slane %v335_v62, 1  ;;  %v440_v8 = vrot.slane %v335_v62, 2 }
  0x2d   : > { %487 = vrot.lane.b32.xlu1 %v383_v18, %s1790_s6  ;;  %627 = vrot.lane.b32.xlu0 %v383_v18, %s2594_s10  ;;  %v439_v6 = vsel %vm416_vm0, %v437_v63, %v438_v4  ;;  %v401_v16 = vrot.slane %v2079_v12, 1  ;;  %v402_v17 = vrot.slane %v2082_v15, 1  ;;  %v442_v24 = vrot.slane %v2079_v12, 2 }
  0x2e   : > { %v400_v7 = vsel %vm375_vm1, %v397_v60, %v399_v5  ;;  %v441_v9 = vsel %vm416_vm0, %v438_v4, %v440_v8  ;;  %v406_v55 = vrot.slane %v2129_v47, 1 }
  0x2f   : > { %v403_v20 = vsel %vm375_vm1, %v401_v16, %v402_v17 }
  0x31   : > { %675 = vrot.lane.b32.xlu1 %v424_v22, %s2588_s12  ;;  %629 = vrot.lane.b32.xlu0 %v385_v23, %s2594_s10 }
  0x35   : > { %535 = vrot.lane.b32.xlu1 %v424_v22, %s1789_s5  ;;  %489 = vrot.lane.b32.xlu0 %v385_v23, %s1790_s6  ;;  %v338_v23 = vld [vmem:[%s1910_s27 + $0x88] sm:$0x3] }
  0x36   : > { %v404_v28 = vrot.slane %v338_v23, 1  ;;  %v445_v35 = vrot.slane %v338_v23, 2 }
  0x39   : > { %723 = vrot.lane.b32.xlu1 %v1956_v25, %s1793_s13  ;;  %677 = vrot.lane.b32.xlu0 %v426_v26, %s2588_s12  ;;  %s1795_s12 = smov 32  }
  0x3d   : > { %583 = vrot.lane.b32.xlu1 %v1956_v25, %s2590_s30  ;;  %537 = vrot.lane.b32.xlu0 %v426_v26, %s1789_s5  ;;  %v443_v26 = vrot.slane %v2082_v15, 2 }
  0x3f   : > { %v444_v31 = vsel %vm416_vm0, %v442_v24, %v443_v26  ;;  %v446_v38 = vsel %vm416_vm0, %v443_v26, %v445_v35 }
  0x41   : > { %771 = vrot.lane.b32.xlu1 %v388_v32, %s2592_s24  ;;  %725 = vrot.lane.b32.xlu0 %v1960_v27, %s1793_s13 }
  0x45   : > { %631 = vrot.lane.b32.xlu1 %v388_v32, %s2594_s10  ;;  %585 = vrot.lane.b32.xlu0 %v1960_v27, %s2590_s30 }
  0x49   : > { %819 = vrot.lane.b32.xlu1 %v429_v40, %s1795_s12  ;;  %773 = vrot.lane.b32.xlu0 %v390_v41, %s2592_s24 }
  0x4d   : > { %633 = vrot.lane.b32.xlu1 %v390_v41, %s2594_s10  ;;  %491 = vrot.lane.b32.xlu0 %v388_v32, %s1790_s6  ;;  %v405_v32 = vsel %vm375_vm1, %v402_v17, %v404_v28 }
  0x51   : > { %821 = vrot.lane.b32.xlu1 %v431_v43, %s1795_s12  ;;  %679 = vrot.lane.b32.xlu0 %v429_v40, %s2598_s11 }
  0x55   : > { %539 = vrot.lane.b32.xlu1 %v429_v40, %s1789_s5  ;;  %493 = vrot.lane.b32.xlu0 %v390_v41, %s1790_s6 }
  0x59   : > { %727 = vrot.lane.b32.xlu1 %v2007_v44, %s1793_s13  ;;  %681 = vrot.lane.b32.xlu0 %v431_v43, %s2598_s11 }
  0x5d   : > { %587 = vrot.lane.b32.xlu1 %v2007_v44, %s2590_s30  ;;  %541 = vrot.lane.b32.xlu0 %v431_v43, %s1789_s5 }
  0x61   : > { %775 = vrot.lane.b32.xlu1 %v393_v48, %s2592_s24  ;;  %729 = vrot.lane.b32.xlu0 %v2010_v45, %s1793_s13 }
  0x65   : > { %635 = vrot.lane.b32.xlu1 %v393_v48, %s2594_s10  ;;  %589 = vrot.lane.b32.xlu0 %v2010_v45, %s2590_s30 }
  0x69   : > { %823 = vrot.lane.b32.xlu1 %v434_v53, %s1795_s12  ;;  %777 = vrot.lane.b32.xlu0 %v395_v54, %s2592_s24 }
  0x6d   : > { %637 = vrot.lane.b32.xlu1 %v395_v54, %s2594_s10  ;;  %495 = vrot.lane.b32.xlu0 %v393_v48, %s1790_s6 }
  0x71   : > { %825 = vrot.lane.b32.xlu1 %v436_v56, %s1795_s12  ;;  %683 = vrot.lane.b32.xlu0 %v434_v53, %s2598_s11 }
  0x75   : > { %543 = vrot.lane.b32.xlu1 %v434_v53, %s1789_s5  ;;  %497 = vrot.lane.b32.xlu0 %v395_v54, %s1790_s6 }
  0x79   : > { %731 = vrot.lane.b32.xlu1 %v2042_v57, %s1793_s13  ;;  %685 = vrot.lane.b32.xlu0 %v436_v56, %s2598_s11 }
  0x7d   : > { %591 = vrot.lane.b32.xlu1 %v2042_v57, %s2590_s30  ;;  %545 = vrot.lane.b32.xlu0 %v436_v56, %s1789_s5  ;;  %v407_v56 = vrot.slane %v2137_v50, 1 }
  0x7f   : > { %v408_v63 = vsel %vm375_vm1, %v406_v55, %v407_v56 }
  0x81   : > { %779 = vrot.lane.b32.xlu1 %v398_v61, %s2592_s24  ;;  %733 = vrot.lane.b32.xlu0 %v2045_v58, %s1793_s13 }
  0x85   : > { %639 = vrot.lane.b32.xlu1 %v398_v61, %s2594_s10  ;;  %593 = vrot.lane.b32.xlu0 %v2045_v58, %s2590_s30 }
  0x89   : > { %827 = vrot.lane.b32.xlu1 %v439_v6, %s1795_s12  ;;  %781 = vrot.lane.b32.xlu0 %v400_v7, %s2592_s24 }
  0x8d   : > { %641 = vrot.lane.b32.xlu1 %v400_v7, %s2594_s10  ;;  %499 = vrot.lane.b32.xlu0 %v398_v61, %s1790_s6 }
  0x91   : > { %829 = vrot.lane.b32.xlu1 %v441_v9, %s1795_s12  ;;  %687 = vrot.lane.b32.xlu0 %v439_v6, %s2598_s11 }
  0x93   : > { %v2074_v10 = vpop.permute.xlu1 %581  ;;  %v580_v11 = vpop.permute.xlu0 %579 }
  0x95   : > { %547 = vrot.lane.b32.xlu1 %v439_v6, %s1789_s5  ;;  %501 = vrot.lane.b32.xlu0 %v400_v7, %s1790_s6  ;;  %v341_v7 = vld [vmem:[%s1910_s27 + $0xa0] sm:$0x3] }
  0x96   : > { %v450_v26 = vrot.slane %v341_v7, 2 }
  0x97   : > { %v532_v13 = vpop.permute.xlu1 %531  ;;  %v484_v14 = vpop.permute.xlu0 %483 }
  0x98   : > { %v868_v41 = vsel %vm867_vm3, %v1919_v2, %v484_v14  ;;  %v409_v14 = vrot.slane %v341_v7, 1 }
  0x99   : > { %735 = vrot.lane.b32.xlu1 %v2079_v12, %s1793_s13  ;;  %689 = vrot.lane.b32.xlu0 %v441_v9, %s2598_s11  ;;  %v885_v46 = vsel %vm884_vm4, %v868_v41, %v532_v13  ;;  %v447_v13 = vrot.slane %v2129_v47, 2  ;;  %v2204_v41 = vld [vmem:[%s1910_s27 + $0xa8] sm:$0xff] }
  0x9a   : > { %v902_v2 = vsel %vm901_vm5, %v885_v46, %v580_v11 }
  0x9b   : > { %v2089_v18 = vpop.permute.xlu1 %533  ;;  %v486_v19 = vpop.permute.xlu0 %485 }
  0x9c   : > { %v869_v52 = vsel %vm867_vm3, %v1926_v3, %v486_v19 }
  0x9d   : > { %595 = vrot.lane.b32.xlu1 %v2079_v12, %s2590_s30  ;;  %549 = vrot.lane.b32.xlu0 %v441_v9, %s1789_s5  ;;  %v886_v3 = vsel %vm884_vm4, %v869_v52, %v2089_v18 }
  0x9e   : > { %v903_v4 = vsel %vm901_vm5, %v886_v3, %v2074_v10  ;;  %v448_v10 = vrot.slane %v2137_v50, 2 }
  0x9f   : > { %v2095_v21 = vpop.permute.xlu1 %487  ;;  %v628_v22 = vpop.permute.xlu0 %627 }
  0xa0   : > { %v919_v51 = vsel %vm918_vm6, %v902_v2, %v628_v22  ;;  %v410_v22 = vsel %vm375_vm1, %v407_v56, %v409_v14  ;;  %v2213_v2 = vld [vmem:[%s1910_s27 + $0xb0] sm:$0xff] }
  0xa1   : > { %783 = vrot.lane.b32.xlu1 %v403_v20, %s2592_s24  ;;  %737 = vrot.lane.b32.xlu0 %v2082_v15, %s1793_s13 }
  0xa3   : > { %v676_v29 = vpop.permute.xlu1 %675  ;;  %v630_v30 = vpop.permute.xlu0 %629 }
  0xa4   : > { %v936_v53 = vsel %vm935_vm7, %v919_v51, %v676_v29  ;;  %v920_v8 = vsel %vm918_vm6, %v903_v4, %v630_v30  ;;  %v451_v30 = vsel %vm416_vm0, %v448_v10, %v450_v26  ;;  %v412_v51 = vrot.slane %v2213_v2, 1 }
  0xa5   : > { %643 = vrot.lane.b32.xlu1 %v403_v20, %s2594_s10  ;;  %597 = vrot.lane.b32.xlu0 %v2082_v15, %s2590_s30 }
  0xa7   : > { %v2108_v33 = vpop.permute.xlu1 %535  ;;  %v2110_v34 = vpop.permute.xlu0 %489 }
  0xa8   : > { %v871_v55 = vsel %vm867_vm3, %v1913_v0, %v2110_v34  ;;  %v344_v0 = vld [vmem:[%s1910_s27 + $0xb8] sm:$0x3]  ;;  %s2599_s27 = smul.u32 54, %s1901_s9  ;;  %s2600_s9 = smov 12  }
  0xa9   : > { %831 = vrot.lane.b32.xlu1 %v444_v31, %s1795_s12  ;;  %785 = vrot.lane.b32.xlu0 %v405_v32, %s2592_s24  ;;  %v414_v4 = vrot.slane %v344_v0, 1 }
  0xaa   : > { %s314_s23 = sadd.s32 %s1578_s8, %s2599_s27 }
  0xab   : > { %v724_v36 = vpop.permute.xlu1 %723  ;;  %v678_v37 = vpop.permute.xlu0 %677 }
  0xac   : > { %v953_v54 = vsel %vm952_vm8, %v936_v53, %v724_v36  ;;  %v937_v9 = vsel %vm935_vm7, %v920_v8, %v678_v37  ;;  %v870_v37 = vsel %vm867_vm3, %v1916_v1, %v2095_v21 }
  0xad   : > { %645 = vrot.lane.b32.xlu1 %v405_v32, %s2594_s10  ;;  %503 = vrot.lane.b32.xlu0 %v403_v20, %s1790_s6  ;;  %v449_v20 = vsel %vm416_vm0, %v447_v13, %v448_v10  ;;  %v415_v13 = vsel %vm375_vm1, %v412_v51, %v414_v4 }
  0xaf   : > { %v2117_v39 = vpop.permute.xlu1 %583  ;;  %v2119_v40 = vpop.permute.xlu0 %537 }
  0xb0   : > { %v888_v56 = vsel %vm884_vm4, %v871_v55, %v2119_v40 }
  0xb1   : > { %833 = vrot.lane.b32.xlu1 %v446_v38, %s1795_s12  ;;  %691 = vrot.lane.b32.xlu0 %v444_v31, %s2598_s11 }
  0xb3   : > { %v772_v42 = vpop.permute.xlu1 %771  ;;  %v726_v43 = vpop.permute.xlu0 %725 }
  0xb4   : > { %v970_v59 = vsel %vm969_vm9, %v953_v54, %v772_v42  ;;  %v954_v11 = vsel %vm952_vm8, %v937_v9, %v726_v43 }
  0xb5   : > { %551 = vrot.lane.b32.xlu1 %v444_v31, %s1789_s5  ;;  %505 = vrot.lane.b32.xlu0 %v405_v32, %s1790_s6 }
  0xb7   : > { %v2132_v48 = vpop.permute.xlu1 %631  ;;  %v2134_v49 = vpop.permute.xlu0 %585 }
  0xb9   : > { %739 = vrot.lane.b32.xlu1 %v2129_v47, %s1793_s13  ;;  %693 = vrot.lane.b32.xlu0 %v446_v38, %s2598_s11 }
  0xbb   : > { %v820_v60 = vpop.permute.xlu1 %819  ;;  %v774_v61 = vpop.permute.xlu0 %773 }
  0xbc   : > { %v987_v62 = vsel %vm986_vm10, %v970_v59, %v820_v60  ;;  %v971_v16 = vsel %vm969_vm9, %v954_v11, %v774_v61  ;;  %v905_v60 = vsel %vm901_vm5, %v888_v56, %v2134_v49  ;;  %v452_v49 = vrot.slane %v2204_v41, 2 }
  0xbd   : > { %599 = vrot.lane.b32.xlu1 %v2129_v47, %s2590_s30  ;;  %553 = vrot.lane.b32.xlu0 %v446_v38, %s1789_s5  ;;  %v887_v38 = vsel %vm884_vm4, %v870_v37, %v2108_v33 }
  0xbe   : > { %1542 = vmatprep.mubr.msk.f32.mxu0 %vm1008_vm11, %v987_v62  ;;  %v904_v42 = vsel %vm901_vm5, %v887_v38, %v2117_v39  ;;  %v411_v39 = vrot.slane %v2204_v41, 1 }
  0xbf   : > { %v2160_v5 = vpop.permute.xlu1 %633  ;;  %v2162_v6 = vpop.permute.xlu0 %491  ;;  %v921_v1 = vsel %vm918_vm6, %v904_v42, %v2132_v48 }
  0xc0   : > { %v413_v59 = vsel %vm375_vm1, %v411_v39, %v412_v51  ;;  %v922_v34 = vsel %vm918_vm6, %v905_v60, %v2160_v5 }
  0xc1   : > { %787 = vrot.lane.b32.xlu1 %v408_v63, %s2592_s24  ;;  %741 = vrot.lane.b32.xlu0 %v2137_v50, %s1793_s13 }
  0xc3   : > { %v822_v17 = vpop.permute.xlu1 %821  ;;  %v680_v18 = vpop.permute.xlu0 %679 }
  0xc4   : > { %v988_v19 = vsel %vm986_vm10, %v971_v16, %v822_v17  ;;  %v938_v21 = vsel %vm935_vm7, %v921_v1, %v680_v18  ;;  %v455_v16 = vrot.slane %v344_v0, 2 }
  0xc5   : > { %647 = vrot.lane.b32.xlu1 %v408_v63, %s2594_s10  ;;  %601 = vrot.lane.b32.xlu0 %v2137_v50, %s2590_s30 }
  0xc6   : > { %1543 = vmatmul.mubr.msk.f32.vlgmr.msra.gmra.mxu0 %vm1008_vm11, %v988_v19 }
  0xc7   : > { %v2181_v23 = vpop.permute.xlu1 %539  ;;  %v2183_v24 = vpop.permute.xlu0 %493 }
  0xc9   : > { %835 = vrot.lane.b32.xlu1 %v449_v20, %s1795_s12  ;;  %789 = vrot.lane.b32.xlu0 %v410_v22, %s2592_s24 }
  0xcb   : > { %v728_v28 = vpop.permute.xlu1 %727  ;;  %v682_v29 = vpop.permute.xlu0 %681 }
  0xcc   : > { %v955_v33 = vsel %vm952_vm8, %v938_v21, %v728_v28  ;;  %v939_v62 = vsel %vm935_vm7, %v922_v34, %v682_v29  ;;  %v872_v29 = vsel %vm867_vm3, %v1956_v25, %v2162_v6 }
  0xcd   : > { %649 = vrot.lane.b32.xlu1 %v410_v22, %s2594_s10  ;;  %507 = vrot.lane.b32.xlu0 %v408_v63, %s1790_s6  ;;  %v453_v63 = vrot.slane %v2213_v2, 2 }
  0xcf   : > { %v2190_v31 = vpop.permute.xlu1 %587  ;;  %v2192_v32 = vpop.permute.xlu0 %541  ;;  %v454_v11 = vsel %vm416_vm0, %v452_v49, %v453_v63  ;;  %v456_v19 = vsel %vm416_vm0, %v453_v63, %v455_v16 }
  0xd1   : > { %837 = vrot.lane.b32.xlu1 %v451_v30, %s1795_s12  ;;  %695 = vrot.lane.b32.xlu0 %v449_v20, %s2598_s11 }
  0xd3   : > { %v776_v35 = vpop.permute.xlu1 %775  ;;  %v730_v36 = vpop.permute.xlu0 %729 }
  0xd4   : > { %v972_v52 = vsel %vm969_vm9, %v955_v33, %v776_v35  ;;  %v956_v40 = vsel %vm952_vm8, %v939_v62, %v730_v36 }
  0xd5   : > { %555 = vrot.lane.b32.xlu1 %v449_v20, %s1789_s5  ;;  %509 = vrot.lane.b32.xlu0 %v410_v22, %s1790_s6 }
  0xd7   : > { %v2208_v43 = vpop.permute.xlu1 %635  ;;  %v2210_v46 = vpop.permute.xlu0 %589 }
  0xd9   : > { %743 = vrot.lane.b32.xlu1 %v2204_v41, %s1793_s13  ;;  %697 = vrot.lane.b32.xlu0 %v451_v30, %s2598_s11 }
  0xdb   : > { %v824_v53 = vpop.permute.xlu1 %823  ;;  %v778_v54 = vpop.permute.xlu0 %777 }
  0xdc   : > { %v989_v48 = vsel %vm986_vm10, %v972_v52, %v824_v53  ;;  %v973_v7 = vsel %vm969_vm9, %v956_v40, %v778_v54 }
  0xdd   : > { %603 = vrot.lane.b32.xlu1 %v2204_v41, %s2590_s30  ;;  %557 = vrot.lane.b32.xlu0 %v451_v30, %s1789_s5  ;;  %v889_v30 = vsel %vm884_vm4, %v872_v29, %v2181_v23 }
  0xde   : > { %1545 = vmatprep.mubr.msk.f32.mxu0 %vm1008_vm11, %v989_v48  ;;  %v906_v36 = vsel %vm901_vm5, %v889_v30, %v2190_v31 }
  0xdf   : > { %v2239_v61 = vpop.permute.xlu1 %637  ;;  %v2241_v3 = vpop.permute.xlu0 %495  ;;  %v923_v1 = vsel %vm918_vm6, %v906_v36, %v2208_v43  ;;  %v873_v43 = vsel %vm867_vm3, %v1960_v27, %v2183_v24 }
  0xe0   : > { %v890_v52 = vsel %vm884_vm4, %v873_v43, %v2192_v32 }
  0xe1   : > { %791 = vrot.lane.b32.xlu1 %v413_v59, %s2592_s24  ;;  %745 = vrot.lane.b32.xlu0 %v2213_v2, %s1793_s13  ;;  %v907_v54 = vsel %vm901_vm5, %v890_v52, %v2210_v46 }
  0xe2   : > { %v924_v27 = vsel %vm918_vm6, %v907_v54, %v2239_v61 }
  0xe3   : > { %v826_v8 = vpop.permute.xlu1 %825  ;;  %v684_v9 = vpop.permute.xlu0 %683 }
  0xe4   : > { %v990_v5 = vsel %vm986_vm10, %v973_v7, %v826_v8  ;;  %v940_v25 = vsel %vm935_vm7, %v923_v1, %v684_v9 }
  0xe5   : > { %651 = vrot.lane.b32.xlu1 %v413_v59, %s2594_s10  ;;  %605 = vrot.lane.b32.xlu0 %v2213_v2, %s2590_s30  ;;  %s1473_s30 = sshll.u32 %s314_s23, 3 }
  0xe6   : > { %1546 = vmatmul.mubr.msk.f32.gmra.mxu0 %vm1008_vm11, %v990_v5 }
  0xe7   : > { %v2261_v10 = vpop.permute.xlu1 %543  ;;  %v2263_v14 = vpop.permute.xlu0 %497 }
  0xe9   : > { %839 = vrot.lane.b32.xlu1 %v454_v11, %s1795_s12  ;;  %793 = vrot.lane.b32.xlu0 %v415_v13, %s2592_s24 }
  0xeb   : > { %v732_v17 = vpop.permute.xlu1 %731  ;;  %v686_v18 = vpop.permute.xlu0 %685 }
  0xec   : > { %v957_v6 = vsel %vm952_vm8, %v940_v25, %v732_v17  ;;  %v941_v24 = vsel %vm935_vm7, %v924_v27, %v686_v18 }
  0xed   : > { %653 = vrot.lane.b32.xlu1 %v415_v13, %s2594_s10  ;;  %511 = vrot.lane.b32.xlu0 %v413_v59, %s1790_s6  ;;  %s2281_s10 = scalar_lea.vmem %s2583_s1, %s1473_s30  ;;  %s2601_s30 = smov 28  }
  0xee   : > { %v345_v35 = vld [vmem:[%s2281_s10] sm:$0xff]  ;;  %v346_v42 = vld [vmem:[%s2281_s10 + $0x8] sm:$0xff]  ;;  %v347_v56 = vld [vmem:[%s2281_s10 + $0x10] sm:$0x3] }
  0xef   : > { %v2272_v20 = vpop.permute.xlu1 %591  ;;  %v2274_v22 = vpop.permute.xlu0 %545  ;;  %v460_v23 = vrot.slane %v345_v35, 1  ;;  %v461_v21 = vrot.slane %v346_v42, 1  ;;  %v465_v59 = vrot.slane %v345_v35, 2  ;;  %v466_v60 = vrot.slane %v346_v42, 2  ;;  %v349_v16 = vld [vmem:[%s2281_s10 + $0x20] sm:$0xff]  ;;  %v348_v17 = vld [vmem:[%s2281_s10 + $0x18] sm:$0xff] }
  0xf0   : > { %v463_v0 = vrot.slane %v347_v56, 1  ;;  %v468_v7 = vrot.slane %v347_v56, 2  ;;  %v350_v18 = vld [vmem:[%s2281_s10 + $0x28] sm:$0x3]  ;;  %v479_v36 = vrot.slane %v349_v16, 2  ;;  %s2447_s10 = sand.u32 1, %s1762_s16  }
  0xf1   : > { %841 = vrot.lane.b32.xlu1 %v456_v19, %s1795_s12  ;;  %699 = vrot.lane.b32.xlu0 %v454_v11, %s2598_s11  ;;  %v462_v53 = vsel %vm375_vm1, %v460_v23, %v461_v21  ;;  %v467_v61 = vsel %vm416_vm0, %v465_v59, %v466_v60  ;;  %v481_v23 = vrot.slane %v350_v18, 2 }
  0xf2   : > { %v464_v49 = vsel %vm375_vm1, %v461_v21, %v463_v0  ;;  %v469_v5 = vsel %vm416_vm0, %v466_v60, %v468_v7 }
  0xf3   : > { %v780_v26 = vpop.permute.xlu1 %779  ;;  %v734_v28 = vpop.permute.xlu0 %733 }
  0xf4   : > { %v974_v31 = vsel %vm969_vm9, %v957_v6, %v780_v26  ;;  %v958_v32 = vsel %vm952_vm8, %v941_v24, %v734_v28  ;;  %v473_v26 = vrot.slane %v348_v17, 1  ;;  %v476_v28 = vrot.slane %v350_v18, 1 }
  0xf5   : > { %559 = vrot.lane.b32.xlu1 %v454_v11, %s1789_s5  ;;  %513 = vrot.lane.b32.xlu0 %v415_v13, %s1790_s6  ;;  %s2602_s6 = smov 16  }
  0xf7   : > { %v2293_v37 = vpop.permute.xlu1 %639  ;;  %v2295_v38 = vpop.permute.xlu0 %593 }
  0xf9   : > { %747 = vrot.lane.b32.xlu1 %v345_v35, %s1793_s13  ;;  %701 = vrot.lane.b32.xlu0 %v456_v19, %s2598_s11 }
  0xfb   : > { %v828_v33 = vpop.permute.xlu1 %827  ;;  %v782_v39 = vpop.permute.xlu0 %781 }
  0xfc   : > { %v991_v51 = vsel %vm986_vm10, %v974_v31, %v828_v33  ;;  %v975_v46 = vsel %vm969_vm9, %v958_v32, %v782_v39  ;;  %v482_v39 = vsel %vm416_vm0, %v479_v36, %v481_v23 }
  0xfd   : > { %607 = vrot.lane.b32.xlu1 %v345_v35, %s2600_s9  ;;  %561 = vrot.lane.b32.xlu0 %v456_v19, %s1789_s5  ;;  %v474_v19 = vrot.slane %v349_v16, 1  ;;  %v874_v35 = vsel %vm867_vm3, %v2007_v44, %v2241_v3 }
  0xfe   : > { %1548 = vmatprep.mubr.msk.f32.mxu0 %vm1008_vm11, %v991_v51  ;;  %v891_v1 = vsel %vm884_vm4, %v874_v35, %v2261_v10 }
  0xff   : > { %v2317_v48 = vpop.permute.xlu1 %641  ;;  %v2319_v55 = vpop.permute.xlu0 %499  ;;  %v477_v25 = vsel %vm375_vm1, %v474_v19, %v476_v28  ;;  %v475_v6 = vsel %vm375_vm1, %v473_v26, %v474_v19  ;;  %v908_v21 = vsel %vm901_vm5, %v891_v1, %v2272_v20 }
 0x100   : > { %v925_v44 = vsel %vm918_vm6, %v908_v21, %v2293_v37  ;;  %v875_v37 = vsel %vm867_vm3, %v2010_v45, %v2263_v14  ;;  %v876_v7 = vsel %vm867_vm3, %v2042_v57, %v2319_v55 }
 0x101   : > { %795 = vrot.lane.b32.xlu1 %v462_v53, %s2601_s30  ;;  %749 = vrot.lane.b32.xlu0 %v346_v42, %s1793_s13  ;;  %v892_v54 = vsel %vm884_vm4, %v875_v37, %v2274_v22 }
 0x102   : > { %v909_v56 = vsel %vm901_vm5, %v892_v54, %v2295_v38 }
 0x103   : > { %v830_v34 = vpop.permute.xlu1 %829  ;;  %v688_v62 = vpop.permute.xlu0 %687  ;;  %v926_v32 = vsel %vm918_vm6, %v909_v56, %v2317_v48 }
 0x104   : > { %v992_v40 = vsel %vm986_vm10, %v975_v46, %v830_v34  ;;  %v942_v3 = vsel %vm935_vm7, %v925_v44, %v688_v62 }
 0x105   : > { %655 = vrot.lane.b32.xlu1 %v462_v53, %s2602_s6  ;;  %609 = vrot.lane.b32.xlu0 %v346_v42, %s2600_s9  ;;  %v478_v42 = vrot.slane %v348_v17, 2 }
 0x106   : > { %1549 = vmatmul.mubr.msk.f32.gmra.mxu0 %vm1008_vm11, %v992_v40 }
 0x107   : > { %v2335_v63 = vpop.permute.xlu1 %547  ;;  %v2337_v4 = vpop.permute.xlu0 %501  ;;  %v480_v51 = vsel %vm416_vm0, %v478_v42, %v479_v36 }
 0x108   : > { %v877_v57 = vsel %vm867_vm3, %v2045_v58, %v2337_v4 }
 0x109   : > { %843 = vrot.lane.b32.xlu1 %v467_v61, %s1795_s12  ;;  %797 = vrot.lane.b32.xlu0 %v464_v49, %s2601_s30 }
 0x10b   : > { %v736_v8 = vpop.permute.xlu1 %735  ;;  %v690_v9 = vpop.permute.xlu0 %689 }
 0x10c   : > { %v959_v10 = vsel %vm952_vm8, %v942_v3, %v736_v8  ;;  %v943_v59 = vsel %vm935_vm7, %v926_v32, %v690_v9  ;;  %v893_v8 = vsel %vm884_vm4, %v876_v7, %v2335_v63 }
 0x10d   : > { %703 = vrot.lane.b32.xlu1 %v467_v61, %s2598_s11  ;;  %657 = vrot.lane.b32.xlu0 %v464_v49, %s2602_s6 }
 0x10f   : > { %v596_v11 = vpop.permute.xlu1 %595  ;;  %v2344_v13 = vpop.permute.xlu0 %549 }
 0x110   : > { %v910_v9 = vsel %vm901_vm5, %v893_v8, %v596_v11  ;;  %v894_v55 = vsel %vm884_vm4, %v877_v57, %v2344_v13 }
 0x111   : > { %705 = vrot.lane.b32.xlu1 %v469_v5, %s2598_s11  ;;  %845 = vrot.lane.b32.xlu0 %v469_v5, %s1795_s12  ;;  %s1495_s11 = sshll.u32 %s1774_s19, 5 }
 0x113   : > { %v784_v29 = vpop.permute.xlu1 %783  ;;  %v738_v30 = vpop.permute.xlu0 %737 }
 0x114   : > { %v976_v43 = vsel %vm969_vm9, %v959_v10, %v784_v29  ;;  %v960_v45 = vsel %vm952_vm8, %v943_v59, %v738_v30 }
 0x115   : > { %753 = vrot.lane.b32.xlu1 %v349_v16, %s1793_s13  ;;  %751 = vrot.lane.b32.xlu0 %v348_v17, %s1793_s13  ;;  %s1467_s13 = sshll.u32 %s2447_s10, 7 }
 0x116   : > { %s2457_s24 = scalar_lea.vmem [#allocation2], %s1467_s13 }
 0x117   : > { %v644_v31 = vpop.permute.xlu1 %643  ;;  %v598_v33 = vpop.permute.xlu0 %597  ;;  %s1305_s27 = sshll.u32 %s2457_s24, 4  ;;  %s2496_s27 = int_to_ptr.vmem [resolvable:$true] %s1305_s27 }
 0x118   : > { %v927_v17 = vsel %vm918_vm6, %v910_v9, %v644_v31  ;;  %v911_v63 = vsel %vm901_vm5, %v894_v55, %v598_v33  ;;  %s1664_s13 = scalar_lea.vmem %s2496_s27, 2048 }
 0x119   : > { %801 = vrot.lane.b32.xlu1 %v477_v25, %s2601_s30  ;;  %799 = vrot.lane.b32.xlu0 %v475_v6, %s2601_s30  ;;  %p1665_p1 = scmp.ne.s32.totalorder %s2496_s27, %s1664_s13 }
 0x11b   : > { %v832_v20 = vpop.permute.xlu1 %831  ;;  %v786_v52 = vpop.permute.xlu0 %785  ;;  %p1666_p2 = pnand %p1665_p1, %p1875_p3 }
 0x11c   : > { %v993_v53 = vsel %vm986_vm10, %v976_v43, %v832_v20  ;;  %v977_v14 = vsel %vm969_vm9, %v960_v45, %v786_v52 }
 0x11d   : > { %849 = vrot.lane.b32.xlu1 %v482_v39, %s1795_s12  ;;  %847 = vrot.lane.b32.xlu0 %v480_v51, %s1795_s12  ;;  %s1508_s12 = sshll.u32 %s1770_s18, 4  ;;  %p1667_p4 = pneg %p1666_p2 }
 0x11e   : > { %1551 = vmatprep.mubr.msk.f32.mxu0 %vm1008_vm11, %v993_v53  ;;  %s1302_s8 = sadd.s32 %s1508_s12, %s1495_s11  ;;  %s1796_s12 = smov [#allocation2]  }
 0x11f   : > { %v646_v27 = vpop.permute.xlu1 %645  ;;  %v504_v24 = vpop.permute.xlu0 %503  ;;  %s1496_s23 = sshll.u32 %s1302_s8, 7  ;;  %s1668_s11 = sshll.u32 %s1796_s12, 4  ;;  %s1669_s11 = int_to_ptr.vmem [resolvable:$false] %s1668_s11 }
 0x120   : > { %v928_v36 = vsel %vm918_vm6, %v911_v63, %v646_v27  ;;  %v878_v39 = vsel %vm867_vm3, %v2079_v12, %v504_v24  ;;  %s2502_s30 = scalar_lea.hbm %s2585_s3, %s1496_s23  ;;  %s1670_s8 = scalar_lea.vmem %s1669_s11, 4096 }
 0x121   : > { %p1671_p5 = scmp.lt.s32.totalorder %s2496_s27, %s1669_s11  ;;  %p1672_p6 = scmp.lt.s32.totalorder %s1670_s8, %s1664_s13 }
 0x123   : > { %v834_v60 = vpop.permute.xlu1 %833  ;;  %v692_v0 = vpop.permute.xlu0 %691  ;;  %p1673_p7 = por %p1672_p6, %p1671_p5 }
 0x124   : > { %v994_v22 = vsel %vm986_vm10, %v977_v14, %v834_v60  ;;  %v944_v18 = vsel %vm935_vm7, %v927_v17, %v692_v0 }
 0x125   : > { %1552 = vmatmul.mubr.msk.f32.gmra.mxu0 %vm1008_vm11, %v994_v22  ;;  %p1674_p9 = pnand %p1673_p7, %p1667_p4 }
 0x127   : > { %v552_v46 = vpop.permute.xlu1 %551  ;;  %v506_v34 = vpop.permute.xlu0 %505 }
 0x128   : > { %v895_v51 = vsel %vm884_vm4, %v878_v39, %v552_v46  ;;  %v879_v12 = vsel %vm867_vm3, %v2082_v15, %v506_v34 }
 0x12b   : > { %v740_v38 = vpop.permute.xlu1 %739  ;;  %v694_v62 = vpop.permute.xlu0 %693 }
 0x12c   : > { %v961_v19 = vsel %vm952_vm8, %v944_v18, %v740_v38  ;;  %v945_v42 = vsel %vm935_vm7, %v928_v36, %v694_v62 }
 0x12f   : > { %v600_v40 = vpop.permute.xlu1 %599  ;;  %v554_v61 = vpop.permute.xlu0 %553 }
 0x130   : > { %v912_v43 = vsel %vm901_vm5, %v895_v51, %v600_v40  ;;  %v896_v24 = vsel %vm884_vm4, %v879_v12, %v554_v61 }
 0x133   : > { %v788_v49 = vpop.permute.xlu1 %787  ;;  %v742_v48 = vpop.permute.xlu0 %741 }
 0x134   : > { %v978_v26 = vsel %vm969_vm9, %v961_v19, %v788_v49  ;;  %v962_v1 = vsel %vm952_vm8, %v945_v42, %v742_v48 }
 0x137   : > { %v648_v5 = vpop.permute.xlu1 %647  ;;  %v602_v16 = vpop.permute.xlu0 %601 }
 0x138   : > { %v929_v53 = vsel %vm918_vm6, %v912_v43, %v648_v5  ;;  %v913_v45 = vsel %vm901_vm5, %v896_v24, %v602_v16 }
 0x13b   : > { %v836_v28 = vpop.permute.xlu1 %835  ;;  %v790_v29 = vpop.permute.xlu0 %789 }
 0x13c   : > { %v995_v30 = vsel %vm986_vm10, %v978_v26, %v836_v28  ;;  %v979_v25 = vsel %vm969_vm9, %v962_v1, %v790_v29 }
 0x13d   : > { %1554 = vmatprep.mubr.msk.f32.mxu1 %vm1008_vm11, %v995_v30 }
 0x13f   : > { %v650_v11 = vpop.permute.xlu1 %649  ;;  %v508_v35 = vpop.permute.xlu0 %507 }
 0x140   : > { %v930_v0 = vsel %vm918_vm6, %v913_v45, %v650_v11  ;;  %v880_v16 = vsel %vm867_vm3, %v2129_v47, %v508_v35 }
 0x143   : > { %v838_v6 = vpop.permute.xlu1 %837  ;;  %v696_v23 = vpop.permute.xlu0 %695 }
 0x144   : > { %v996_v58 = vsel %vm986_vm10, %v979_v25, %v838_v6  ;;  %v946_v37 = vsel %vm935_vm7, %v929_v53, %v696_v23 }
 0x145   : > { %1555 = vmatmul.mubr.msk.f32.vlgmr.msra.gmra.mxu1 %vm1008_vm11, %v996_v58 }
 0x147   : > { %v556_v4 = vpop.permute.xlu1 %555  ;;  %v510_v13 = vpop.permute.xlu0 %509 }
 0x148   : > { %v897_v17 = vsel %vm884_vm4, %v880_v16, %v556_v4  ;;  %v881_v47 = vsel %vm867_vm3, %v2137_v50, %v510_v13 }
 0x14b   : > { %v744_v21 = vpop.permute.xlu1 %743  ;;  %v698_v31 = vpop.permute.xlu0 %697 }
 0x14c   : > { %v963_v54 = vsel %vm952_vm8, %v946_v37, %v744_v21  ;;  %v947_v22 = vsel %vm935_vm7, %v930_v0, %v698_v31 }
 0x14f   : > { %v604_v33 = vpop.permute.xlu1 %603  ;;  %v558_v44 = vpop.permute.xlu0 %557 }
 0x150   : > { %v914_v18 = vsel %vm901_vm5, %v897_v17, %v604_v33  ;;  %v898_v35 = vsel %vm884_vm4, %v881_v47, %v558_v44 }
 0x153   : > { %v792_v3 = vpop.permute.xlu1 %791  ;;  %v746_v10 = vpop.permute.xlu0 %745 }
 0x154   : > { %v980_v56 = vsel %vm969_vm9, %v963_v54, %v792_v3  ;;  %v964_v46 = vsel %vm952_vm8, %v947_v22, %v746_v10 }
 0x157   : > { %v652_v20 = vpop.permute.xlu1 %651  ;;  %v606_v52 = vpop.permute.xlu0 %605 }
 0x158   : > { %v931_v28 = vsel %vm918_vm6, %v914_v18, %v652_v20  ;;  %v915_v36 = vsel %vm901_vm5, %v898_v35, %v606_v52 }
 0x15b   : > { %v840_v27 = vpop.permute.xlu1 %839  ;;  %v794_v32 = vpop.permute.xlu0 %793 }
 0x15c   : > { %v997_v59 = vsel %vm986_vm10, %v980_v56, %v840_v27  ;;  %v981_v38 = vsel %vm969_vm9, %v964_v46, %v794_v32 }
 0x15d   : > { %1557 = vmatprep.mubr.msk.f32.mxu1 %vm1008_vm11, %v997_v59 }
 0x15f   : > { %v654_v14 = vpop.permute.xlu1 %653  ;;  %v512_v60 = vpop.permute.xlu0 %511 }
 0x160   : > { %v932_v25 = vsel %vm918_vm6, %v915_v36, %v654_v14  ;;  %v882_v44 = vsel %vm867_vm3, %v2204_v41, %v512_v60 }
 0x163   : > { %v842_v62 = vpop.permute.xlu1 %841  ;;  %v700_v40 = vpop.permute.xlu0 %699 }
 0x164   : > { %v998_v15 = vsel %vm986_vm10, %v981_v38, %v842_v62  ;;  %v948_v29 = vsel %vm935_vm7, %v931_v28, %v700_v40 }
 0x165   : > { %1558 = vmatmul.mubr.msk.f32.gmra.mxu1 %vm1008_vm11, %v998_v15 }
 0x167   : > { %v560_v34 = vpop.permute.xlu1 %559  ;;  %v514_v61 = vpop.permute.xlu0 %513 }
 0x168   : > { %v883_v10 = vsel %vm867_vm3, %v2213_v2, %v514_v61  ;;  %v899_v20 = vsel %vm884_vm4, %v882_v44, %v560_v34 }
 0x16b   : > { %v748_v49 = vpop.permute.xlu1 %747  ;;  %v702_v48 = vpop.permute.xlu0 %701 }
 0x16c   : > { %v965_v30 = vsel %vm952_vm8, %v948_v29, %v748_v49  ;;  %v949_v6 = vsel %vm935_vm7, %v932_v25, %v702_v48 }
 0x16f   : > { %v608_v7 = vpop.permute.xlu1 %607  ;;  %v562_v8 = vpop.permute.xlu0 %561 }
 0x170   : > { %v900_v52 = vsel %vm884_vm4, %v883_v10, %v562_v8  ;;  %v916_v53 = vsel %vm901_vm5, %v899_v20, %v608_v7 }
 0x173   : > { %v796_v9 = vpop.permute.xlu1 %795  ;;  %v750_v5 = vpop.permute.xlu0 %749 }
 0x174   : > { %v982_v57 = vsel %vm969_vm9, %v965_v30, %v796_v9  ;;  %v966_v23 = vsel %vm952_vm8, %v949_v6, %v750_v5 }
 0x177   : > { %v656_v19 = vpop.permute.xlu1 %655  ;;  %v610_v26 = vpop.permute.xlu0 %609 }
 0x178   : > { %v917_v37 = vsel %vm901_vm5, %v900_v52, %v610_v26  ;;  %v933_v41 = vsel %vm918_vm6, %v916_v53, %v656_v19 }
 0x17b   : > { %v844_v55 = vpop.permute.xlu1 %843  ;;  %v798_v63 = vpop.permute.xlu0 %797 }
 0x17c   : > { %v999_v11 = vsel %vm986_vm10, %v982_v57, %v844_v55  ;;  %v983_v50 = vsel %vm969_vm9, %v966_v23, %v798_v63 }
 0x17d   : > { %1560 = vmatprep.mubr.msk.f32.mxu1 %vm1008_vm11, %v999_v11 }
 0x17f   : > { %v704_v42 = vpop.permute.xlu1 %703  ;;  %v658_v1 = vpop.permute.xlu0 %657 }
 0x180   : > { %v934_v2 = vsel %vm918_vm6, %v917_v37, %v658_v1  ;;  %v950_v32 = vsel %vm935_vm7, %v933_v41, %v704_v42 }
 0x183   : > { %v706_v58 = vpop.permute.xlu1 %705  ;;  %v846_v4 = vpop.permute.xlu0 %845 }
 0x184   : > { %v1000_v13 = vsel %vm986_vm10, %v983_v50, %v846_v4  ;;  %v951_v59 = vsel %vm935_vm7, %v934_v2, %v706_v58 }
 0x185   : > { %1561 = vmatmul.mubr.msk.f32.gmra.mxu1 %vm1008_vm11, %v1000_v13 }
 0x186   : > { %v1544_v21 = vpop.f32.mrf.mxu0 }
 0x187   : > { %1207 = vst [vmem:[%s2457_s24 + $0x8] sm:$0xff] %v1544_v21  ;;  %v754_v31 = vpop.permute.xlu1 %753  ;;  %v752_v33 = vpop.permute.xlu0 %751  ;;  %v1244_v39 = vmul.f32 %v1544_v21, %v1544_v21 }
 0x188   : > { %v1127_v3 = vpop.f32.mrf.mxu0  ;;  %v968_v12 = vsel %vm952_vm8, %v951_v59, %v754_v31  ;;  %v967_v24 = vsel %vm952_vm8, %v950_v32, %v752_v33 }
 0x189   : > { %1206 = vst [vmem:[%s2457_s24] sm:$0xff] %v1127_v3  ;;  %v1222_v51 = vadd.f32 %v1544_v21, %v1127_v3  ;;  %v1243_v43 = vmul.f32 %v1127_v3, %v1127_v3 }
 0x18b   : > { %v1259_v54 = vadd.f32 %v1244_v39, %v1243_v43  ;;  %v802_v56 = vpop.permute.xlu1 %801  ;;  %v800_v27 = vpop.permute.xlu0 %799 }
 0x18c   : > { %v985_v45 = vsel %vm969_vm9, %v968_v12, %v802_v56  ;;  %v984_v14 = vsel %vm969_vm9, %v967_v24, %v800_v27 }
 0x18f   : > { %v850_v60 = vpop.permute.xlu1 %849  ;;  %v848_v0 = vpop.permute.xlu0 %847 }
 0x190   : > { %v1002_v22 = vsel %vm986_vm10, %v985_v45, %v850_v60  ;;  %v1001_v46 = vsel %vm986_vm10, %v984_v14, %v848_v0 }
 0x191   : > { %1563 = vmatprep.mubr.msk.f32.mxu1 %vm1008_vm11, %v1001_v46 }
 0x192   : > { %1564 = vmatmul.mubr.msk.f32.gmra.mxu1 %vm1008_vm11, %v1002_v22 }
 0x1a6   : > { %v1547_v38 = vpop.f32.mrf.mxu0 }
 0x1a7   : > { %1209 = vst [vmem:[%s2457_s24 + $0x18] sm:$0xff] %v1547_v38  ;;  %v1246_v34 = vmul.f32 %v1547_v38, %v1547_v38 }
 0x1a8   : > { %v1137_v62 = vpop.f32.mrf.mxu0 }
 0x1a9   : > { %1208 = vst [vmem:[%s2457_s24 + $0x10] sm:$0xff] %v1137_v62  ;;  %v1223_v40 = vadd.f32 %v1222_v51, %v1137_v62  ;;  %v1245_v15 = vmul.f32 %v1137_v62, %v1137_v62 }
 0x1ab   : > { %v1260_v61 = vadd.f32 %v1259_v54, %v1245_v15  ;;  %v1224_v49 = vadd.f32 %v1547_v38, %v1223_v40 }
 0x1ad   : > { %v1261_v48 = vadd.f32 %v1260_v61, %v1246_v34 }
 0x1c6   : > { %v1550_v7 = vpop.f32.mrf.mxu0 }
 0x1c7   : > { %1211 = vst [vmem:[%s2457_s24 + $0x28] sm:$0xff] %v1550_v7  ;;  %v1248_v16 = vmul.f32 %v1550_v7, %v1550_v7 }
 0x1c8   : > { %v1147_v8 = vpop.f32.mrf.mxu0 }
 0x1c9   : > { %1210 = vst [vmem:[%s2457_s24 + $0x20] sm:$0xff] %v1147_v8  ;;  %v1225_v9 = vadd.f32 %v1224_v49, %v1147_v8  ;;  %v1247_v5 = vmul.f32 %v1147_v8, %v1147_v8 }
 0x1cb   : > { %v1262_v17 = vadd.f32 %v1261_v48, %v1247_v5  ;;  %v1226_v18 = vadd.f32 %v1550_v7, %v1225_v9 }
 0x1cd   : > { %v1263_v19 = vadd.f32 %v1262_v17, %v1248_v16 }
 0x1e5   : > { %v1553_v26 = vpop.f32.mrf.mxu0 }
 0x1e6   : > { %1213 = vst [vmem:[%s2457_s24 + $0x38] sm:$0xff] %v1553_v26  ;;  %v1250_v57 = vmul.f32 %v1553_v26, %v1553_v26 }
 0x1e7   : > { %v1157_v28 = vpop.f32.mrf.mxu0 }
 0x1e8   : > { %1212 = vst [vmem:[%s2457_s24 + $0x30] sm:$0xff] %v1157_v28  ;;  %v1227_v29 = vadd.f32 %v1226_v18, %v1157_v28  ;;  %v1249_v30 = vmul.f32 %v1157_v28, %v1157_v28 }
 0x1ea   : > { %v1228_v55 = vadd.f32 %v1553_v26, %v1227_v29  ;;  %v1264_v63 = vadd.f32 %v1263_v19, %v1249_v30 }
 0x1ec   : > { %v1265_v11 = vadd.f32 %v1264_v63, %v1250_v57 }
 0x205   : > { %v1556_v47 = vpop.f32.mrf.mxu1 }
 0x206   : > { %1215 = vst [vmem:[%s2457_s24 + $0x48] sm:$0xff] %v1556_v47  ;;  %v1252_v1 = vmul.f32 %v1556_v47, %v1556_v47 }
 0x207   : > { %v1167_v35 = vpop.f32.mrf.mxu1 }
 0x208   : > { %1214 = vst [vmem:[%s2457_s24 + $0x40] sm:$0xff] %v1167_v35  ;;  %v1229_v36 = vadd.f32 %v1228_v55, %v1167_v35  ;;  %v1251_v42 = vmul.f32 %v1167_v35, %v1167_v35 }
 0x20a   : > { %v1266_v25 = vadd.f32 %v1265_v11, %v1251_v42  ;;  %v1230_v6 = vadd.f32 %v1556_v47, %v1229_v36 }
 0x20c   : > { %v1267_v23 = vadd.f32 %v1266_v25, %v1252_v1 }
 0x225   : > { %v1559_v50 = vpop.f32.mrf.mxu1 }
 0x226   : > { %1217 = vst [vmem:[%s2457_s24 + $0x58] sm:$0xff] %v1559_v50  ;;  %v1254_v44 = vmul.f32 %v1559_v50, %v1559_v50 }
 0x227   : > { %v1177_v58 = vpop.f32.mrf.mxu1 }
 0x228   : > { %1216 = vst [vmem:[%s2457_s24 + $0x50] sm:$0xff] %v1177_v58  ;;  %v1253_v13 = vmul.f32 %v1177_v58, %v1177_v58  ;;  %v1231_v31 = vadd.f32 %v1230_v6, %v1177_v58 }
 0x22a   : > { %v1268_v33 = vadd.f32 %v1267_v23, %v1253_v13  ;;  %v1232_v3 = vadd.f32 %v1559_v50, %v1231_v31 }
 0x22c   : > { %v1269_v51 = vadd.f32 %v1268_v33, %v1254_v44 }
 0x245   : > { %v1562_v4 = vpop.f32.mrf.mxu1 }
 0x246   : > { %1219 = vst [vmem:[%s2457_s24 + $0x68] sm:$0xff] %v1562_v4  ;;  %v1256_v52 = vmul.f32 %v1562_v4, %v1562_v4 }
 0x247   : > { %v1187_v21 = vpop.f32.mrf.mxu1 }
 0x248   : > { %1218 = vst [vmem:[%s2457_s24 + $0x60] sm:$0xff] %v1187_v21  ;;  %v1255_v10 = vmul.f32 %v1187_v21, %v1187_v21  ;;  %v1233_v39 = vadd.f32 %v1232_v3, %v1187_v21 }
 0x24a   : > { %v1270_v43 = vadd.f32 %v1269_v51, %v1255_v10  ;;  %v1234_v53 = vadd.f32 %v1562_v4, %v1233_v39 }
 0x24c   : > { %v1271_v27 = vadd.f32 %v1270_v43, %v1256_v52 }
 0x252   : > { %v1565_v20 = vpop.f32.mrf.mxu1 }
 0x253   : > { %1221 = vst [vmem:[%s2457_s24 + $0x78] sm:$0xff] %v1565_v20 }
 0x254   : > { %v1197_v37 = vpop.f32.mrf.mxu1 }
 0x255   : > { %1220 = vst [vmem:[%s2457_s24 + $0x70] sm:$0xff] %v1197_v37  ;;  %v1235_v54 = vadd.f32 %v1234_v53, %v1197_v37  ;;  %v1257_v56 = vmul.f32 %v1197_v37, %v1197_v37 }
 0x256   : > { %1677 = shalt.err (!%p1674_p9)
}
 0x257   : > { %s1678_s24 = scalar_lea.hbm %s2502_s30, 2048  ;;  %s1682_s9 = scalar_lea.hbm %s2585_s3, 8192 }
 0x258   : > { %p1679_p10 = scmp.ne.s32.totalorder %s2502_s30, %s1678_s24  ;;  %p1683_p13 = scmp.lt.s32.totalorder %s2502_s30, %s2585_s3 }
 0x259   : > { %p1684_p0 = scmp.lt.s32.totalorder %s1682_s9, %s1678_s24 }
 0x25a   : > { %p1680_p11 = pnand %p1679_p10, %p1875_p3 }
 0x25b   : > { %p1685_p1 = por %p1684_p0, %p1683_p13 }
 0x25c   : > { %p1681_p12 = pneg %p1680_p11 }
 0x25e   : > { %p1686_p2 = pnand %p1685_p1, %p1681_p12 }
 0x260   : > { %1689 = shalt.err (!%p1686_p2)
}
 0x261   : > { %s1797_s13 = smov 128   ;;  %s2603_s11 = scalar_lea.sflag [#allocation3], %s2447_s10  ;;  %v1258_v41 = vmul.f32 %v1565_v20, %v1565_v20  ;;  %v1236_v2 = vadd.f32 %v1565_v20, %v1235_v54  ;;  %v1272_v32 = vadd.f32 %v1271_v27, %v1257_v56  ;;  %vm1280_vm12 = vcmask 1040384  }
 0x262   : > { %1579 = dma.vmem_to_hbm [thread:$0]  (%p1875_p3), %s2496_s27, 2048, %s2502_s30, %s2603_s11, %s1797_s13, %s1797_s13, %s1789_s5  }
 0x263   : > { %v1237_v59 = vrot.slane %v1236_v2, 4  ;;  %v1273_v12 = vadd.f32 %v1272_v32, %v1258_v41  ;;  %s1468_s6 = sshll.u32 %s2447_s10, 1  ;;  %s1497_s8 = sshll.u32 %s1774_s19, 1 }
 0x264   : > { %s1319_s24 = sadd.s32 %s1770_s18, %s1497_s8  ;;  %s283_s27 = scalar_lea.vmem [#allocation4], %s1468_s6 }
 0x265   : > { %v1238_v24 = vadd.f32 %v1237_v59, %v1236_v2  ;;  %v1274_v45 = vrot.slane %v1273_v12, 4  ;;  %s1498_s5 = sshll.u32 %s1319_s24, 5  ;;  %s1323_s30 = sshll.u32 %s283_s27, 4  ;;  %s1324_s30 = int_to_ptr.vmem [resolvable:$true] %s1323_s30 }
 0x266   : > { %s2535_s9 = scalar_lea.hbm %s2586_s4, %s1498_s5  ;;  %s1289_s19 = scalar_lea.sflag [#allocation5], %s2447_s10 }
 0x267   : > { %v1239_v14 = vrot.slane %v1238_v24, 2  ;;  %v1275_v60 = vadd.f32 %v1274_v45, %v1273_v12  ;;  %s1690_s18 = scalar_lea.vmem %s1324_s30, 32  ;;  %s1798_s12 = smov [#allocation4]  }
 0x268   : > { %p1691_p4 = scmp.ne.s32.totalorder %s1324_s30, %s1690_s18  ;;  %s1694_s13 = sshll.u32 %s1798_s12, 4  ;;  %s1695_s13 = int_to_ptr.vmem [resolvable:$false] %s1694_s13 }
 0x269   : > { %v1240_v0 = vadd.f32 %v1239_v14, %v1238_v24  ;;  %v1276_v22 = vrot.slane %v1275_v60, 2  ;;  %s1696_s11 = scalar_lea.vmem %s1695_s13, 64  ;;  %p1697_p7 = scmp.lt.s32.totalorder %s1324_s30, %s1695_s13 }
 0x26a   : > { %p1692_p5 = pnand %p1691_p4, %p1875_p3  ;;  %p1698_p9 = scmp.lt.s32.totalorder %s1696_s11, %s1690_s18 }
 0x26b   : > { %v1241_v46 = vrot.slane %v1240_v0, 1  ;;  %v1277_v38 = vadd.f32 %v1276_v22, %v1275_v60 }
 0x26c   : > { %p1693_p6 = pneg %p1692_p5  ;;  %p1699_p10 = por %p1698_p9, %p1697_p7 }
 0x26d   : > { %v1278_v62 = vrot.slane %v1277_v38, 1  ;;  %v1242_v40 = vadd.f32 %v1241_v46, %v1240_v0 }
 0x26e   : > { %p1700_p11 = pnand %p1699_p10, %p1693_p6 }
 0x26f   : > { %v1279_v15 = vadd.f32 %v1278_v62, %v1277_v38 }
 0x271   : > { %v1281_v34 = vsel %vm1280_vm12, %v1242_v40, %v1279_v15 }
 0x272   : > { %1282 = vst [vmem:[%s283_s27] sm:$0x3] %v1281_v34 }
 0x273   : > { %1703 = shalt.err (!%p1700_p11)
}
 0x274   : > { %s1704_s6 = scalar_lea.hbm %s2535_s9, 32  ;;  %s1708_s24 = scalar_lea.hbm %s2586_s4, 128 }
 0x275   : > { %p1705_p12 = scmp.ne.s32.totalorder %s2535_s9, %s1704_s6  ;;  %p1709_p1 = scmp.lt.s32.totalorder %s2535_s9, %s2586_s4 }
 0x276   : > { %p1710_p2 = scmp.lt.s32.totalorder %s1708_s24, %s1704_s6 }
 0x277   : > { %p1706_p13 = pnand %p1705_p12, %p1875_p3 }
 0x278   : > { %p1711_p4 = por %p1710_p2, %p1709_p1 }
 0x279   : > { %p1707_p0 = pneg %p1706_p13 }
 0x27b   : > { %p1712_p5 = pnand %p1711_p4, %p1707_p0 }
 0x27d   : > { %1715 = shalt.err (!%p1712_p5)
}
 0x27e   : > { %1580 = dma.vmem_to_hbm [thread:$0]  (%p1875_p3), %s1324_s30, 32, %s2535_s9, %s1289_s19  }
 0x27f PF: > { %p1590_p6 = scmp.ge.s32.totalorder %s1786_s22, 2  ;;  %s1335_s23 = sand.u32 1, %s1758_s15  }
 0x280   : > { %s1336_s14 = scalar_lea.sflag [#allocation3], %s1335_s23 }
 0x281   : > { %p1584_p7 = pnand %p1590_p6, %p1884_p8 }
 0x283   : > { %p1585_p9 = pneg %p1584_p7 }
 0x285   : > { %1749 = dma.done.wait (%p1585_p9), %s1336_s14, 2048  }
 0x286   : > { %1751 = vsyncadd (%p1585_p9), %s1336_s14, 4294965248  ;;  %s1345_s18 = scalar_lea.sflag [#allocation5], %s1335_s23 }
 0x287   : > { %1753 = dma.done.wait (%p1585_p9), %s1345_s18, 32  }
 0x288   : > { %1755 = vsyncadd (%p1585_p9), %s1345_s18, 4294967264  ;;  %s21_s22 = sadd.s32 1, %s1786_s22   ;;  %s2604_s15 = smov %s1762_s16 }
 0x289   : > { %p18_p10 = scmp.ge.s32.totalorder %s21_s22, 6   ;;  %s2605_s16 = smov %s1766_s17 }
 0x28a   : > { %s2606_s17 = smov %s1893_s7  ;;  %s2607_s18 = smov %s1778_s20 }
 0x28b   : > { %s2608_s19 = smov %s1782_s21  ;;  %s2609_s20 = smov %s2612_s25 }
 0x28c   : > { %s2610_s21 = smov %s2616_s26  ;;  %20 = sbr.rel (!%p18_p10) target bundleno = 7 (0x7), region = 87 }
 0x291   :  { %1350 = vsyncpa [#allocation3], 1 }
 0x292   :  { %1352 = vsyncpa [#allocation3 + $0x1], 1 }
 0x293   :  { %1353 = vsyncpa [#allocation5], 1 }
 0x294   :  { %1355 = vsyncpa [#allocation5 + $0x1], 1 }

</bundles_post_ra>
